<compile_context>
chip_gen: v5e
topology: v5e:2x2
jax: 0.10.0
libtpu: 0.0.40
codegen_flags: <defaults>
</compile_context>

<pallas_src>
import functools

import jax
import jax.numpy as jnp
from jax.experimental import pallas as pl
from jax.experimental.pallas import tpu as pltpu


def _round_up(x, m):
  return (x + m - 1) // m * m


# ---------- Pass 1: conv matmul + max-pool + partial BN statistics ----------
def _conv_pool_stats_kernel(patches_ref, w_ref, b_ref,
                            pooled_ref, stats_ref, *, pp, tm, m_true):
  # patches_ref: (PP, TM, Kp)   pool-offset-major im2col patches (padded)
  # w_ref:       (Kp, Cp)       weights (padded)
  # b_ref:       (1, Cp)        conv bias (padded)
  # pooled_ref:  (TM, Cp)       pooled conv output for this tile (f32)
  # stats_ref:   (8, Cp)        row 0 = partial sum, row 1 = partial sum-sq
  w = w_ref[...]

  # Conv as MXU matmul per pool offset, fused with the max-pool reduction.
  pooled = jnp.dot(patches_ref[0], w, preferred_element_type=jnp.float32)
  for p in range(1, pp):
    pooled = jnp.maximum(
        pooled, jnp.dot(patches_ref[p], w, preferred_element_type=jnp.float32))
  # Bias hoisted out of the max: max(a+b, c+b) == max(a, c) + b.
  pooled = pooled + b_ref[...]
  pooled_ref[...] = pooled

  # Partial BatchNorm statistics for this tile; padded rows are excluded so
  # they never bias the batch mean/variance.
  row = pl.program_id(0) * tm + jax.lax.broadcasted_iota(jnp.int32, (tm, 1), 0)
  pv = jnp.where(row < m_true, pooled, 0.0)
  s = jnp.sum(pv, axis=0, keepdims=True)
  q = jnp.sum(pv * pv, axis=0, keepdims=True)
  stats_ref[...] = jnp.concatenate(
      [s, q, jnp.zeros((6, s.shape[1]), jnp.float32)], axis=0)


# ---------- Pass 2: BatchNorm apply (folded scale/shift) + ReLU -------------
def _bn_relu_kernel(pooled_ref, scale_ref, shift_ref, o_ref):
  y = pooled_ref[...] * scale_ref[...] + shift_ref[...]
  o_ref[...] = jnp.maximum(y, 0.0).astype(o_ref.dtype)


def conv_pool_bn_relu(x_nchw, w_oihw, bias, gamma, beta,
                      pool_kernel, pool_stride, *, eps=1e-5,
                      tile_m=256, matmul_dtype=jnp.float32):
  N, Cin, H, W = x_nchw.shape
  Cout, _, KH, KW = w_oihw.shape
  Ho, Wo = H - KH + 1, W - KW + 1                      # valid conv, stride 1
  PK, PS = pool_kernel, pool_stride
  Hp = (Ho - PK) // PS + 1
  Wp = (Wo - PK) // PS + 1
  PP = PK * PK
  K = KH * KW * Cin
  M = N * Hp * Wp

  # Lane/sublane-friendly padded sizes.
  Kp = _round_up(K, 128)
  Cp = _round_up(Cout, 128)
  TM = min(_round_up(tile_m, 8), _round_up(M, 8))      # sublane-aligned M tile
  Mp = _round_up(M, TM)
  n_tiles = Mp // TM

  # ---- glue (pure JAX): layout change + im2col + pool-offset gather --------
  x = jnp.transpose(x_nchw, (0, 2, 3, 1)).astype(jnp.float32)     # NHWC
  cols = [x[:, kh:kh + Ho, kw:kw + Wo, :]
          for kh in range(KH) for kw in range(KW)]
  patches_full = jnp.concatenate(cols, axis=-1)        # (N, Ho, Wo, K)

  # For PS >= PK (non-overlapping pooling, as here) this stacking is a pure
  # reorder with no data duplication.
  # TODO(synk): for overlapping pooling (PS < PK) read pool offsets with
  # strided pl.ds from patches_full instead of materializing PP copies.
  wins = []
  for i in range(PK):
    for j in range(PK):
      sl = patches_full[:, i:i + (Hp - 1) * PS + 1:PS,
                        j:j + (Wp - 1) * PS + 1:PS, :]  # (N, Hp, Wp, K)
      wins.append(sl.reshape(M, K))
  patches = jnp.stack(wins, axis=0)                     # (PP, M, K)
  patches = jnp.pad(patches, ((0, 0), (0, Mp - M), (0, Kp - K)))
  patches = patches.astype(matmul_dtype)                # (PP, Mp, Kp)

  w_mat = jnp.transpose(w_oihw, (2, 3, 1, 0)).reshape(K, Cout)
  w_mat = jnp.pad(w_mat.astype(jnp.float32),
                  ((0, Kp - K), (0, Cp - Cout))).astype(matmul_dtype)
  b2 = jnp.pad(bias.astype(jnp.float32).reshape(1, Cout),
               ((0, 0), (0, Cp - Cout)))

  # ---- pass 1: conv + pool + partial stats (gridded, pipelined) ------------
  elt = jnp.dtype(matmul_dtype).itemsize
  vmem_need = (2 * PP * TM * Kp * elt        # double-buffered patches tiles
               + Kp * Cp * elt + Cp * 4      # weights + bias (resident)
               + 2 * TM * Cp * 4             # double-buffered pooled output
               + 2 * 8 * Cp * 4)             # stats output
  vmem_limit = int(min(64 * 2**20, max(2 * vmem_need, 16 * 2**20)))

  kernel1 = functools.partial(_conv_pool_stats_kernel, pp=PP, tm=TM, m_true=M)
  pooled, stats = pl.pallas_call(
      kernel1,
      out_shape=(jax.ShapeDtypeStruct((Mp, Cp), jnp.float32),
                 jax.ShapeDtypeStruct((8 * n_tiles, Cp), jnp.float32)),
      grid=(n_tiles,),
      in_specs=[pl.BlockSpec((PP, TM, Kp), lambda i: (0, i, 0)),
                pl.BlockSpec((Kp, Cp), lambda i: (0, 0)),
                pl.BlockSpec((1, Cp), lambda i: (0, 0))],
      out_specs=(pl.BlockSpec((TM, Cp), lambda i: (i, 0)),
                 pl.BlockSpec((8, Cp), lambda i: (i, 0))),
      compiler_params=pltpu.CompilerParams(
          dimension_semantics=("parallel",),
          vmem_limit_bytes=vmem_limit),
      cost_estimate=pl.CostEstimate(
          flops=2 * PP * Mp * Kp * Cp,
          transcendentals=0,
          bytes_accessed=(PP * Mp * Kp * elt + Kp * Cp * elt
                          + Mp * Cp * 4 + 8 * n_tiles * Cp * 4)),
  )(patches, w_mat, b2)

  # ---- tiny cross-tile BN reduction + scale/shift folding (plain JAX) ------
  stats = stats.reshape(n_tiles, 8, Cp)
  tot = jnp.sum(stats[:, 0, :], axis=0)
  tot_sq = jnp.sum(stats[:, 1, :], axis=0)
  mean = tot / M
  # Guard tiny negative values from E[x^2]-E[x]^2 cancellation.
  var = jnp.maximum(tot_sq / M - mean * mean, 0.0)
  inv = jax.lax.rsqrt(var + eps)
  g = jnp.pad(gamma.astype(jnp.float32), (0, Cp - Cout))
  bt = jnp.pad(beta.astype(jnp.float32), (0, Cp - Cout))
  scale = (g * inv).reshape(1, Cp)
  shift = (bt - mean * g * inv).reshape(1, Cp)

  # ---- pass 2: normalize + ReLU (gridded, lane-dense stores) ---------------
  out2d = pl.pallas_call(
      _bn_relu_kernel,
      out_shape=jax.ShapeDtypeStruct((Mp, Cp), jnp.float32),
      grid=(n_tiles,),
      in_specs=[pl.BlockSpec((TM, Cp), lambda i: (i, 0)),
                pl.BlockSpec((1, Cp), lambda i: (0, 0)),
                pl.BlockSpec((1, Cp), lambda i: (0, 0))],
      out_specs=pl.BlockSpec((TM, Cp), lambda i: (i, 0)),
      compiler_params=pltpu.CompilerParams(
          dimension_semantics=("parallel",),
          vmem_limit_bytes=vmem_limit),
  )(pooled, scale, shift)

  # strip padding, back to NCHW
  out = out2d[:M, :Cout].reshape(N, Hp, Wp, Cout)
  return jnp.transpose(out, (0, 3, 1, 2))


def _reference(x_nchw, w_oihw, bias, gamma, beta, PK, PS, eps=1e-5):
  y = jax.lax.conv_general_dilated(
      x_nchw, w_oihw, window_strides=(1, 1), padding='VALID',
      dimension_numbers=('NCHW', 'OIHW', 'NCHW')) + bias[None, :, None, None]
  y = jax.lax.reduce_window(y, -jnp.inf, jax.lax.max,
                            (1, 1, PK, PK), (1, 1, PS, PS), 'VALID')
  mean = jnp.mean(y, axis=(0, 2, 3), keepdims=True)
  var = jnp.mean((y - mean) ** 2, axis=(0, 2, 3), keepdims=True)
  y = (y - mean) / jnp.sqrt(var + eps) * gamma[None, :, None, None] \
      + beta[None, :, None, None]
  return jnp.maximum(y, 0.0)


if __name__ == "__main__":
  # Module config: Conv(in_channels=4, out_channels=8, kernel=3,
  #                     pool_kernel=2, pool_stride=2)
  in_channels, out_channels, kernel = 4, 8, 3
  pool_kernel, pool_stride = 2, 2

  key = jax.random.PRNGKey(0)
  kx, kw, kb = jax.random.split(key, 3)
  x = jax.random.normal(kx, (2, in_channels, 16, 16), dtype=jnp.float32)
  conv_w = 0.1 * jax.random.normal(
      kw, (out_channels, in_channels, kernel, kernel), dtype=jnp.float32)
  conv_b = 0.1 * jax.random.normal(kb, (out_channels,), dtype=jnp.float32)
  bn_gamma = jnp.ones((out_channels,), jnp.float32)   # BatchNorm2d default init
  bn_beta = jnp.zeros((out_channels,), jnp.float32)

  ref = _reference(x, conv_w, conv_b, bn_gamma, bn_beta,
                   pool_kernel, pool_stride)

  # f32 matmul path (tight tolerance).
  out = conv_pool_bn_relu(x, conv_w, conv_b, bn_gamma, bn_beta,
                          pool_kernel, pool_stride,
                          matmul_dtype=jnp.float32)
  out = jax.block_until_ready(out)
  assert out.shape == (2, out_channels, 7, 7), out.shape
  assert jnp.allclose(out, ref, atol=1e-4, rtol=1e-4), \
      float(jnp.max(jnp.abs(out - ref)))

  # bf16 matmul operands (halves the dominant patches DMA stream on v6e/v7x;
  # VPU math stays f32).  Looser tolerance for bf16 rounding.
  out_bf16 = conv_pool_bn_relu(x, conv_w, conv_b, bn_gamma, bn_beta,
                               pool_kernel, pool_stride,
                               matmul_dtype=jnp.bfloat16)
  out_bf16 = jax.block_until_ready(out_bf16)
  assert jnp.allclose(out_bf16, ref, atol=5e-2, rtol=5e-2), \
      float(jnp.max(jnp.abs(out_bf16 - ref)))

  print("KERNEL_OK")
</pallas_src>

<mosaic_0001>
module attributes {stable_mosaic.version = 11 : i64} {
  func.func @_conv_pool_stats_kernel(%arg0: i32, %arg1: memref<4x104x128xf32, #tpu.memory_space<vmem>>, %arg2: memref<128x128xf32, #tpu.memory_space<vmem>>, %arg3: memref<1x128xf32, #tpu.memory_space<vmem>>, %arg4: memref<104x128xf32, #tpu.memory_space<vmem>>, %arg5: memref<8x128xf32, #tpu.memory_space<vmem>>) attributes {dimension_semantics = [#tpu.dimension_semantics<parallel>], iteration_bounds = array<i64: 1>, scalar_prefetch = 0 : i64, scratch_operands = 0 : i64, tpu.core_type = #tpu.core_type<tc>, window_params = [{transform_indices = @transform_0, window_bounds = array<i64: 4, 104, 128>}, {pipeline_mode = #tpu.pipeline_mode<synchronous>, transform_indices = @transform_1, window_bounds = array<i64: 128, 128>}, {pipeline_mode = #tpu.pipeline_mode<synchronous>, transform_indices = @transform_2, window_bounds = array<i64: 1, 128>}, {transform_indices = @transform_3, window_bounds = array<i64: 104, 128>}, {transform_indices = @transform_4, window_bounds = array<i64: 8, 128>}]} {
    %c0 = arith.constant 0 : index
    %c0_0 = arith.constant 0 : index
    %0 = vector.load %arg2[%c0, %c0_0] : memref<128x128xf32, #tpu.memory_space<vmem>>, vector<128x128xf32>
    %c0_1 = arith.constant 0 : index
    %c0_2 = arith.constant 0 : index
    %c0_3 = arith.constant 0 : index
    %1 = vector.load %arg1[%c0_1, %c0_2, %c0_3] : memref<4x104x128xf32, #tpu.memory_space<vmem>>, vector<1x104x128xf32>
    %2 = vector.shape_cast %1 : vector<1x104x128xf32> to vector<104x128xf32>
    %cst = arith.constant dense<0.000000e+00> : vector<104x128xf32>
    %3 = tpu.matmul %2, %0, %cst {dimension_numbers = #tpu.dot_dimension_numbers<[1], [0], [0], [1], [0, 0, 1, 1], [], []>} : vector<104x128xf32>, vector<128x128xf32>, vector<104x128xf32> -> vector<104x128xf32>
    %c1 = arith.constant 1 : index
    %c0_4 = arith.constant 0 : index
    %c0_5 = arith.constant 0 : index
    %4 = vector.load %arg1[%c1, %c0_4, %c0_5] : memref<4x104x128xf32, #tpu.memory_space<vmem>>, vector<1x104x128xf32>
    %5 = vector.shape_cast %4 : vector<1x104x128xf32> to vector<104x128xf32>
    %cst_6 = arith.constant dense<0.000000e+00> : vector<104x128xf32>
    %6 = tpu.matmul %5, %0, %cst_6 {dimension_numbers = #tpu.dot_dimension_numbers<[1], [0], [0], [1], [0, 0, 1, 1], [], []>} : vector<104x128xf32>, vector<128x128xf32>, vector<104x128xf32> -> vector<104x128xf32>
    %7 = arith.maximumf %3, %6 : vector<104x128xf32>
    %c2 = arith.constant 2 : index
    %c0_7 = arith.constant 0 : index
    %c0_8 = arith.constant 0 : index
    %8 = vector.load %arg1[%c2, %c0_7, %c0_8] : memref<4x104x128xf32, #tpu.memory_space<vmem>>, vector<1x104x128xf32>
    %9 = vector.shape_cast %8 : vector<1x104x128xf32> to vector<104x128xf32>
    %cst_9 = arith.constant dense<0.000000e+00> : vector<104x128xf32>
    %10 = tpu.matmul %9, %0, %cst_9 {dimension_numbers = #tpu.dot_dimension_numbers<[1], [0], [0], [1], [0, 0, 1, 1], [], []>} : vector<104x128xf32>, vector<128x128xf32>, vector<104x128xf32> -> vector<104x128xf32>
    %11 = arith.maximumf %7, %10 : vector<104x128xf32>
    %c3 = arith.constant 3 : index
    %c0_10 = arith.constant 0 : index
    %c0_11 = arith.constant 0 : index
    %12 = vector.load %arg1[%c3, %c0_10, %c0_11] : memref<4x104x128xf32, #tpu.memory_space<vmem>>, vector<1x104x128xf32>
    %13 = vector.shape_cast %12 : vector<1x104x128xf32> to vector<104x128xf32>
    %cst_12 = arith.constant dense<0.000000e+00> : vector<104x128xf32>
    %14 = tpu.matmul %13, %0, %cst_12 {dimension_numbers = #tpu.dot_dimension_numbers<[1], [0], [0], [1], [0, 0, 1, 1], [], []>} : vector<104x128xf32>, vector<128x128xf32>, vector<104x128xf32> -> vector<104x128xf32>
    %15 = arith.maximumf %11, %14 : vector<104x128xf32>
    %c0_13 = arith.constant 0 : index
    %c0_14 = arith.constant 0 : index
    %16 = vector.load %arg3[%c0_13, %c0_14] : memref<1x128xf32, #tpu.memory_space<vmem>>, vector<1x128xf32>
    %17 = vector.broadcast %16 : vector<1x128xf32> to vector<104x128xf32>
    %18 = arith.addf %15, %17 : vector<104x128xf32>
    %c0_15 = arith.constant 0 : index
    %c0_16 = arith.constant 0 : index
    %19 = vector.load %arg4[%c0_15, %c0_16] : memref<104x128xf32, #tpu.memory_space<vmem>>, vector<104x128xf32>
    tpu.vector_store %arg4[%c0_15, %c0_16], %18 {strides = array<i32>} : memref<104x128xf32, #tpu.memory_space<vmem>>, vector<104x128xf32>,
    %c104_i32 = arith.constant 104 : i32
    %20 = arith.muli %arg0, %c104_i32 : i32
    %21 = tpu.iota {dimensions = array<i32: 0>} : vector<104x1xi32>
    %22 = vector.broadcast %20 : i32 to vector<104x1xi32>
    %23 = arith.addi %22, %21 : vector<104x1xi32>
    %c98_i32 = arith.constant 98 : i32
    %24 = vector.broadcast %c98_i32 : i32 to vector<104x1xi32>
    %25 = arith.cmpi slt, %23, %24 : vector<104x1xi32>
    %cst_17 = arith.constant 0.000000e+00 : f32
    %26 = vector.shape_cast %25 : vector<104x1xi1> to vector<104x1xi1>
    %27 = vector.broadcast %26 : vector<104x1xi1> to vector<104x128xi1>
    %28 = vector.broadcast %cst_17 : f32 to vector<104x128xf32>
    %29 = arith.select %27, %18, %28 : vector<104x128xi1>, vector<104x128xf32>
    %cst_18 = arith.constant dense<0.000000e+00> : vector<128xf32>
    %30 = vector.multi_reduction <add>, %29, %cst_18 [0] : vector<104x128xf32> to vector<128xf32>
    %31 = vector.shape_cast %30 : vector<128xf32> to vector<1x128xf32>
    %32 = arith.mulf %29, %29 : vector<104x128xf32>
    %cst_19 = arith.constant dense<0.000000e+00> : vector<128xf32>
    %33 = vector.multi_reduction <add>, %32, %cst_19 [0] : vector<104x128xf32> to vector<128xf32>
    %34 = vector.shape_cast %33 : vector<128xf32> to vector<1x128xf32>
    %cst_20 = arith.constant 0.000000e+00 : f32
    %35 = vector.broadcast %cst_20 : f32 to vector<6x128xf32>
    %36 = tpu.concatenate %31, %34, %35 in 0 : vector<1x128xf32>, vector<1x128xf32>, vector<6x128xf32> -> vector<8x128xf32>
    %c0_21 = arith.constant 0 : index
    %c0_22 = arith.constant 0 : index
    %37 = vector.load %arg5[%c0_21, %c0_22] : memref<8x128xf32, #tpu.memory_space<vmem>>, vector<8x128xf32>
    tpu.vector_store %arg5[%c0_21, %c0_22], %36 {strides = array<i32>} : memref<8x128xf32, #tpu.memory_space<vmem>>, vector<8x128xf32>,
    return
  }
  func.func @transform_0(%arg0: i32) -> (i32, i32, i32) {
    %c0_i32 = arith.constant 0 : i32
    %c0_i32_0 = arith.constant 0 : i32
    %c0_i32_1 = arith.constant 0 : i32
    return %c0_i32, %arg0, %c0_i32_0 : i32, i32, i32
  }
  func.func @transform_1(%arg0: i32) -> (i32, i32) {
    %c0_i32 = arith.constant 0 : i32
    %c0_i32_0 = arith.constant 0 : i32
    %c0_i32_1 = arith.constant 0 : i32
    return %c0_i32, %c0_i32_0 : i32, i32
  }
  func.func @transform_2(%arg0: i32) -> (i32, i32) {
    %c0_i32 = arith.constant 0 : i32
    %c0_i32_0 = arith.constant 0 : i32
    %c0_i32_1 = arith.constant 0 : i32
    return %c0_i32, %c0_i32_0 : i32, i32
  }
  func.func @transform_3(%arg0: i32) -> (i32, i32) {
    %c0_i32 = arith.constant 0 : i32
    %c0_i32_0 = arith.constant 0 : i32
    return %arg0, %c0_i32 : i32, i32
  }
  func.func @transform_4(%arg0: i32) -> (i32, i32) {
    %c0_i32 = arith.constant 0 : i32
    %c0_i32_0 = arith.constant 0 : i32
    return %arg0, %c0_i32 : i32, i32
  }
}

</mosaic_0001>

<bundles_post_ra>
// kernel: tpu_custom_call.1
= control target key start
LH: loop header
LB: loop body
LE: loop exit
PB: predicated region body
PF: predicated region fallthrough
CT: control target
= control target key end

     0   :  { %10 = vsyncpa [#allocation3], 0  ;;  %s790_s0 = inlined_call_operand.hbm [shape: f32[4,104,128], index: 0, kind: input, shape index: {}]   ;;  %s791_s1 = inlined_call_operand.hbm [shape: f32[128,128], index: 1, kind: input, shape index: {}]   ;;  %s792_s2 = inlined_call_operand.vmem [shape: f32[1,128], index: 2, kind: input, shape index: {}]   ;;  %s793_s3 = inlined_call_operand.hbm [shape: f32[104,128], index: 3, kind: output, shape index: {0}]   ;;  %s794_s4 = inlined_call_operand.hbm [shape: f32[8,128], index: 4, kind: output, shape index: {1}]  }
   0x1   :  { %11 = vsyncpa [#allocation6], 0 }
   0x2   :  { %12 = vsyncpa [#allocation4], 0 }
   0x3   :  { %13 = vsyncpa [#allocation9], 0  ;;  %s18_s17 = sshll.u32 %s790_s0, 4  ;;  %s696_s18 = smov [#allocation2]   ;;  %s19_s17 = int_to_ptr.hbm [resolvable:$true] %s18_s17 }
   0x4   :  { %s20_s19 = sshll.u32 %s696_s18, 4  ;;  %s31_s22 = sshll.u32 %s791_s1, 4  ;;  %s21_s19 = int_to_ptr.vmem [resolvable:$true] %s20_s19  ;;  %s32_s22 = int_to_ptr.hbm [resolvable:$true] %s31_s22 }
   0x5   :  { %s697_s23 = smov 128   ;;  %s698_s24 = smov 8  }
   0x6   :  { %26 = dma.hbm_to_vmem [thread:$0]  %s19_s17, 6656, %s21_s19, [#allocation3], %s697_s23, %s697_s23, %s698_s24  }
   0x7   :  { %s699_s25 = smov [#allocation5]  }
   0x8   :  { %s33_s26 = sshll.u32 %s699_s25, 4  ;;  %s34_s26 = int_to_ptr.vmem [resolvable:$true] %s33_s26 }
   0x9   :  { %39 = dma.hbm_to_vmem [thread:$0]  %s32_s22, 2048, %s34_s26, [#allocation6], %s697_s23, %s697_s23, %s698_s24  }
   0xa   :  { %688 = dma.done.wait [#allocation3], 6656  }
   0xb   :  { %689 = vsyncadd [#allocation3], 4294960640 }
   0xc   :  { %690 = dma.done.wait [#allocation6], 2048  }
   0xd   :  { %691 = vsyncadd [#allocation6], 4294965248  ;;  %v65_v0 = vld [vmem:[#allocation5 + $0x78] sm:$0xff]  ;;  %v64_v1 = vld [vmem:[#allocation5 + $0x70] sm:$0xff]  ;;  %s555_s30 = sshll.u32 %s793_s3, 4  ;;  %vm544_vm1 = vcmask 1040384   ;;  %s556_s30 = int_to_ptr.hbm [resolvable:$true] %s555_s30 }
   0xe   :  { %232 = vmatpush.msra.mxu2 %v65_v0  ;;  %315 = vmatpush.msra.mxu3 %v65_v0  ;;  %v63_v2 = vld [vmem:[#allocation5 + $0x68] sm:$0xff]  ;;  %v62_v3 = vld [vmem:[#allocation5 + $0x60] sm:$0xff]  ;;  %v61_v4 = vld [vmem:[#allocation5 + $0x58] sm:$0xff]  ;;  %s701_s3 = smov [#allocation8]   ;;  %s569_s8 = sshll.u32 %s794_s4, 4  ;;  %vm546_vm2 = vcmask 1041408   ;;  %s570_s8 = int_to_ptr.hbm [resolvable:$true] %s569_s8 }
   0xf   :  { %79 = vmatpush.msra.mxu0 %v65_v0  ;;  %149 = vmatpush.msra.mxu1 %v65_v0  ;;  %v60_v5 = vld [vmem:[#allocation5 + $0x50] sm:$0xff]  ;;  %v59_v6 = vld [vmem:[#allocation5 + $0x48] sm:$0xff]  ;;  %v58_v7 = vld [vmem:[#allocation5 + $0x40] sm:$0xff]  ;;  %s567_s5 = sshll.u32 %s701_s3, 4  ;;  %s568_s5 = int_to_ptr.vmem [resolvable:$true] %s567_s5 }
  0x10   :  { %233 = vmatpush.msra.mxu2 %v64_v1  ;;  %316 = vmatpush.msra.mxu3 %v64_v1  ;;  %v57_v8 = vld [vmem:[#allocation5 + $0x38] sm:$0xff]  ;;  %v56_v9 = vld [vmem:[#allocation5 + $0x30] sm:$0xff]  ;;  %v55_v10 = vld [vmem:[#allocation5 + $0x28] sm:$0xff] }
  0x11   :  { %80 = vmatpush.msra.mxu0 %v64_v1  ;;  %150 = vmatpush.msra.mxu1 %v64_v1  ;;  %v54_v11 = vld [vmem:[#allocation5 + $0x20] sm:$0xff]  ;;  %v53_v12 = vld [vmem:[#allocation5 + $0x18] sm:$0xff]  ;;  %v52_v13 = vld [vmem:[#allocation5 + $0x10] sm:$0xff] }
  0x12   :  { %234 = vmatpush.msra.mxu2 %v63_v2  ;;  %317 = vmatpush.msra.mxu3 %v63_v2  ;;  %v51_v14 = vld [vmem:[#allocation5 + $0x8] sm:$0xff]  ;;  %v50_v15 = vld [vmem:[#allocation5] sm:$0xff]  ;;  %v219_v16 = vld [vmem:[#allocation2 + $0xd0] sm:$0xff] }
  0x13   :  { %81 = vmatpush.msra.mxu0 %v63_v2  ;;  %151 = vmatpush.msra.mxu1 %v63_v2  ;;  %v302_v17 = vld [vmem:[#allocation2 + $0x138] sm:$0xff]  ;;  %v66_v18 = vld [vmem:[#allocation2] sm:$0xff]  ;;  %v136_v19 = vld [vmem:[#allocation2 + $0x68] sm:$0xff] }
  0x14   :  { %235 = vmatpush.msra.mxu2 %v62_v3  ;;  %318 = vmatpush.msra.mxu3 %v62_v3  ;;  %v220_v20 = vld [vmem:[#allocation2 + $0xd8] sm:$0xff]  ;;  %v303_v21 = vld [vmem:[#allocation2 + $0x140] sm:$0xff]  ;;  %v67_v22 = vld [vmem:[#allocation2 + $0x8] sm:$0xff] }
  0x15   :  { %82 = vmatpush.msra.mxu0 %v62_v3  ;;  %152 = vmatpush.msra.mxu1 %v62_v3  ;;  %v137_v23 = vld [vmem:[#allocation2 + $0x70] sm:$0xff]  ;;  %v221_v24 = vld [vmem:[#allocation2 + $0xe0] sm:$0xff]  ;;  %v304_v25 = vld [vmem:[#allocation2 + $0x148] sm:$0xff] }
  0x16   :  { %236 = vmatpush.msra.mxu2 %v61_v4  ;;  %319 = vmatpush.msra.mxu3 %v61_v4  ;;  %v68_v26 = vld [vmem:[#allocation2 + $0x10] sm:$0xff]  ;;  %v138_v27 = vld [vmem:[#allocation2 + $0x78] sm:$0xff]  ;;  %v222_v28 = vld [vmem:[#allocation2 + $0xe8] sm:$0xff] }
  0x17   :  { %83 = vmatpush.msra.mxu0 %v61_v4  ;;  %153 = vmatpush.msra.mxu1 %v61_v4  ;;  %v305_v29 = vld [vmem:[#allocation2 + $0x150] sm:$0xff]  ;;  %v69_v30 = vld [vmem:[#allocation2 + $0x18] sm:$0xff]  ;;  %v139_v31 = vld [vmem:[#allocation2 + $0x80] sm:$0xff] }
  0x18   :  { %237 = vmatpush.msra.mxu2 %v60_v5  ;;  %320 = vmatpush.msra.mxu3 %v60_v5  ;;  %v223_v32 = vld [vmem:[#allocation2 + $0xf0] sm:$0xff]  ;;  %v306_v33 = vld [vmem:[#allocation2 + $0x158] sm:$0xff]  ;;  %v70_v34 = vld [vmem:[#allocation2 + $0x20] sm:$0xff] }
  0x19   :  { %84 = vmatpush.msra.mxu0 %v60_v5  ;;  %154 = vmatpush.msra.mxu1 %v60_v5  ;;  %v140_v35 = vld [vmem:[#allocation2 + $0x88] sm:$0xff]  ;;  %v224_v36 = vld [vmem:[#allocation2 + $0xf8] sm:$0xff]  ;;  %v307_v37 = vld [vmem:[#allocation2 + $0x160] sm:$0xff] }
  0x1a   :  { %238 = vmatpush.msra.mxu2 %v59_v6  ;;  %321 = vmatpush.msra.mxu3 %v59_v6  ;;  %v71_v38 = vld [vmem:[#allocation2 + $0x28] sm:$0xff]  ;;  %v141_v39 = vld [vmem:[#allocation2 + $0x90] sm:$0xff]  ;;  %v225_v40 = vld [vmem:[#allocation2 + $0x100] sm:$0xff] }
  0x1b   :  { %85 = vmatpush.msra.mxu0 %v59_v6  ;;  %155 = vmatpush.msra.mxu1 %v59_v6  ;;  %v308_v41 = vld [vmem:[#allocation2 + $0x168] sm:$0xff]  ;;  %v72_v42 = vld [vmem:[#allocation2 + $0x30] sm:$0xff]  ;;  %v142_v43 = vld [vmem:[#allocation2 + $0x98] sm:$0xff] }
  0x1c   :  { %239 = vmatpush.msra.mxu2 %v58_v7  ;;  %322 = vmatpush.msra.mxu3 %v58_v7  ;;  %v226_v44 = vld [vmem:[#allocation2 + $0x108] sm:$0xff]  ;;  %v309_v45 = vld [vmem:[#allocation2 + $0x170] sm:$0xff]  ;;  %v73_v46 = vld [vmem:[#allocation2 + $0x38] sm:$0xff] }
  0x1d   :  { %86 = vmatpush.msra.mxu0 %v58_v7  ;;  %156 = vmatpush.msra.mxu1 %v58_v7  ;;  %v143_v47 = vld [vmem:[#allocation2 + $0xa0] sm:$0xff]  ;;  %v227_v48 = vld [vmem:[#allocation2 + $0x110] sm:$0xff]  ;;  %v310_v49 = vld [vmem:[#allocation2 + $0x178] sm:$0xff] }
  0x1e   :  { %240 = vmatpush.msra.mxu2 %v57_v8  ;;  %323 = vmatpush.msra.mxu3 %v57_v8  ;;  %v74_v50 = vld [vmem:[#allocation2 + $0x40] sm:$0xff]  ;;  %v144_v51 = vld [vmem:[#allocation2 + $0xa8] sm:$0xff]  ;;  %v228_v52 = vld [vmem:[#allocation2 + $0x118] sm:$0xff] }
  0x1f   :  { %87 = vmatpush.msra.mxu0 %v57_v8  ;;  %157 = vmatpush.msra.mxu1 %v57_v8  ;;  %v311_v53 = vld [vmem:[#allocation2 + $0x180] sm:$0xff]  ;;  %v75_v54 = vld [vmem:[#allocation2 + $0x48] sm:$0xff]  ;;  %v145_v55 = vld [vmem:[#allocation2 + $0xb0] sm:$0xff] }
  0x20   :  { %241 = vmatpush.msra.mxu2 %v56_v9  ;;  %324 = vmatpush.msra.mxu3 %v56_v9  ;;  %v229_v56 = vld [vmem:[#allocation2 + $0x120] sm:$0xff]  ;;  %v312_v57 = vld [vmem:[#allocation2 + $0x188] sm:$0xff]  ;;  %v76_v58 = vld [vmem:[#allocation2 + $0x50] sm:$0xff] }
  0x21   :  { %88 = vmatpush.msra.mxu0 %v56_v9  ;;  %158 = vmatpush.msra.mxu1 %v56_v9  ;;  %v146_v59 = vld [vmem:[#allocation2 + $0xb8] sm:$0xff]  ;;  %v230_v60 = vld [vmem:[#allocation2 + $0x128] sm:$0xff]  ;;  %v313_v61 = vld [vmem:[#allocation2 + $0x190] sm:$0xff] }
  0x22   :  { %242 = vmatpush.msra.mxu2 %v55_v10  ;;  %325 = vmatpush.msra.mxu3 %v55_v10  ;;  %v77_v62 = vld [vmem:[#allocation2 + $0x58] sm:$0xff]  ;;  %v147_v63 = vld [vmem:[#allocation2 + $0xc0] sm:$0xff]  ;;  %v231_v0 = vld [vmem:[#allocation2 + $0x130] sm:$0xff] }
  0x23   :  { %89 = vmatpush.msra.mxu0 %v55_v10  ;;  %159 = vmatpush.msra.mxu1 %v55_v10  ;;  %v314_v1 = vld [vmem:[#allocation2 + $0x198] sm:$0xff]  ;;  %v78_v2 = vld [vmem:[#allocation2 + $0x60] sm:$0xff]  ;;  %v148_v3 = vld [vmem:[#allocation2 + $0xc8] sm:$0xff] }
  0x24   :  { %243 = vmatpush.msra.mxu2 %v54_v11  ;;  %326 = vmatpush.msra.mxu3 %v54_v11  ;;  %v742_v10 = vld [vmem:[%s792_s2] ss:$0 sm:$0xff]  ;;  %s700_s2 = smov [#allocation7]  }
  0x25   :  { %90 = vmatpush.msra.mxu0 %v54_v11  ;;  %160 = vmatpush.msra.mxu1 %v54_v11  ;;  %s553_s27 = sshll.u32 %s700_s2, 4  ;;  %s554_s27 = int_to_ptr.vmem [resolvable:$true] %s553_s27 }
  0x26   :  { %244 = vmatpush.msra.mxu2 %v53_v12  ;;  %327 = vmatpush.msra.mxu3 %v53_v12 }
  0x27   :  { %91 = vmatpush.msra.mxu0 %v53_v12  ;;  %161 = vmatpush.msra.mxu1 %v53_v12 }
  0x28   :  { %245 = vmatpush.msra.mxu2 %v52_v13  ;;  %328 = vmatpush.msra.mxu3 %v52_v13 }
  0x29   :  { %92 = vmatpush.msra.mxu0 %v52_v13  ;;  %162 = vmatpush.msra.mxu1 %v52_v13 }
  0x2a   :  { %246 = vmatpush.msra.mxu2 %v51_v14  ;;  %329 = vmatpush.msra.mxu3 %v51_v14 }
  0x2b   :  { %93 = vmatpush.msra.mxu0 %v51_v14  ;;  %163 = vmatpush.msra.mxu1 %v51_v14 }
  0x2c   :  { %247 = vmatpush.msra.mxu2 %v50_v15  ;;  %330 = vmatpush.msra.mxu3 %v50_v15 }
  0x2d   :  { %248 = vmatmul.f32.vlgmr.msra.gmra.mxu2 %v219_v16  ;;  %331 = vmatmul.f32.vlgmr.msra.gmra.mxu3 %v302_v17 }
  0x2e   :  { %94 = vmatpush.msra.mxu0 %v50_v15  ;;  %164 = vmatpush.msra.mxu1 %v50_v15 }
  0x2f   :  { %95 = vmatmul.f32.vlgmr.msra.gmra.mxu0 %v66_v18  ;;  %165 = vmatmul.f32.vlgmr.msra.gmra.mxu1 %v136_v19 }
  0x35   :  { %251 = vmatmul.f32.gmra.mxu2 %v220_v20  ;;  %334 = vmatmul.f32.gmra.mxu3 %v303_v21 }
  0x37   :  { %98 = vmatmul.f32.gmra.mxu0 %v67_v22  ;;  %168 = vmatmul.f32.gmra.mxu1 %v137_v23 }
  0x3d   :  { %254 = vmatmul.f32.gmra.mxu2 %v221_v24  ;;  %337 = vmatmul.f32.gmra.mxu3 %v304_v25 }
  0x3f   :  { %101 = vmatmul.f32.gmra.mxu0 %v68_v26  ;;  %171 = vmatmul.f32.gmra.mxu1 %v138_v27 }
  0x45   :  { %257 = vmatmul.f32.gmra.mxu2 %v222_v28  ;;  %340 = vmatmul.f32.gmra.mxu3 %v305_v29 }
  0x47   :  { %104 = vmatmul.f32.gmra.mxu0 %v69_v30  ;;  %174 = vmatmul.f32.gmra.mxu1 %v139_v31 }
  0x4d   :  { %260 = vmatmul.f32.gmra.mxu2 %v223_v32  ;;  %343 = vmatmul.f32.gmra.mxu3 %v306_v33 }
  0x4f   :  { %107 = vmatmul.f32.gmra.mxu0 %v70_v34  ;;  %177 = vmatmul.f32.gmra.mxu1 %v140_v35 }
  0x55   :  { %263 = vmatmul.f32.gmra.mxu2 %v224_v36  ;;  %346 = vmatmul.f32.gmra.mxu3 %v307_v37 }
  0x57   :  { %110 = vmatmul.f32.gmra.mxu0 %v71_v38  ;;  %180 = vmatmul.f32.gmra.mxu1 %v141_v39 }
  0x5d   :  { %266 = vmatmul.f32.gmra.mxu2 %v225_v40  ;;  %349 = vmatmul.f32.gmra.mxu3 %v308_v41 }
  0x5f   :  { %113 = vmatmul.f32.gmra.mxu0 %v72_v42  ;;  %183 = vmatmul.f32.gmra.mxu1 %v142_v43 }
  0x65   :  { %269 = vmatmul.f32.gmra.mxu2 %v226_v44  ;;  %352 = vmatmul.f32.gmra.mxu3 %v309_v45 }
  0x67   :  { %116 = vmatmul.f32.gmra.mxu0 %v73_v46  ;;  %186 = vmatmul.f32.gmra.mxu1 %v143_v47 }
  0x6d   :  { %272 = vmatmul.f32.gmra.mxu2 %v227_v48  ;;  %355 = vmatmul.f32.gmra.mxu3 %v310_v49 }
  0x6f   :  { %119 = vmatmul.f32.gmra.mxu0 %v74_v50  ;;  %189 = vmatmul.f32.gmra.mxu1 %v144_v51 }
  0x75   :  { %275 = vmatmul.f32.gmra.mxu2 %v228_v52  ;;  %358 = vmatmul.f32.gmra.mxu3 %v311_v53 }
  0x77   :  { %122 = vmatmul.f32.gmra.mxu0 %v75_v54  ;;  %192 = vmatmul.f32.gmra.mxu1 %v145_v55 }
  0x7d   :  { %278 = vmatmul.f32.gmra.mxu2 %v229_v56  ;;  %361 = vmatmul.f32.gmra.mxu3 %v312_v57 }
  0x7f   :  { %125 = vmatmul.f32.gmra.mxu0 %v76_v58  ;;  %195 = vmatmul.f32.gmra.mxu1 %v146_v59 }
  0x85   :  { %281 = vmatmul.f32.gmra.mxu2 %v230_v60  ;;  %364 = vmatmul.f32.gmra.mxu3 %v313_v61 }
  0x87   :  { %128 = vmatmul.f32.gmra.mxu0 %v77_v62  ;;  %198 = vmatmul.f32.gmra.mxu1 %v147_v63 }
  0x8d   :  { %284 = vmatmul.f32.gmra.mxu2 %v231_v0  ;;  %367 = vmatmul.f32.gmra.mxu3 %v314_v1 }
  0x8f   :  { %131 = vmatmul.f32.gmra.mxu0 %v78_v2  ;;  %201 = vmatmul.f32.gmra.mxu1 %v148_v3 }
  0xac   :  { %v96_v4 = vpop.f32.mrf.mxu0  ;;  %v166_v5 = vpop.f32.mrf.mxu1 }
  0xad   :  { %v205_v6 = vmax.f32 %v96_v4, %v166_v5 }
  0xb0   :  { %v249_v7 = vpop.f32.mrf.mxu2  ;;  %v332_v8 = vpop.f32.mrf.mxu3 }
  0xb1   :  { %v288_v9 = vmax.f32 %v205_v6, %v249_v7 }
  0xb3   :  { %v371_v11 = vmax.f32 %v288_v9, %v332_v8 }
  0xb4   :  { %v99_v12 = vpop.f32.mrf.mxu0  ;;  %v169_v13 = vpop.f32.mrf.mxu1 }
  0xb5   :  { %v388_v14 = vadd.f32 %v742_v10, %v371_v11  ;;  %v206_v15 = vmax.f32 %v99_v12, %v169_v13 }
  0xb7   :  { %401 = vst [vmem:[#allocation7] sm:$0xff] %v388_v14  ;;  %v513_v24 = vmul.f32 %v388_v14, %v388_v14 }
  0xb8   :  { %v252_v16 = vpop.f32.mrf.mxu2  ;;  %v335_v17 = vpop.f32.mrf.mxu3 }
  0xb9   :  { %v289_v18 = vmax.f32 %v206_v15, %v252_v16 }
  0xbb   :  { %v372_v19 = vmax.f32 %v289_v18, %v335_v17 }
  0xbc   :  { %v102_v20 = vpop.f32.mrf.mxu0  ;;  %v172_v21 = vpop.f32.mrf.mxu1 }
  0xbd   :  { %v389_v22 = vadd.f32 %v742_v10, %v372_v19  ;;  %v207_v23 = vmax.f32 %v102_v20, %v172_v21 }
  0xbf   :  { %402 = vst [vmem:[#allocation7 + $0x8] sm:$0xff] %v389_v22  ;;  %v495_v25 = vadd.f32 %v389_v22, %v388_v14  ;;  %v514_v26 = vmul.f32 %v389_v22, %v389_v22 }
  0xc0   :  { %v255_v27 = vpop.f32.mrf.mxu2  ;;  %v338_v28 = vpop.f32.mrf.mxu3 }
  0xc1   :  { %v746_v29 = vadd.f32 %v514_v26, %v513_v24  ;;  %v290_v30 = vmax.f32 %v207_v23, %v255_v27 }
  0xc3   :  { %v373_v31 = vmax.f32 %v290_v30, %v338_v28 }
  0xc4   :  { %v105_v32 = vpop.f32.mrf.mxu0  ;;  %v175_v33 = vpop.f32.mrf.mxu1 }
  0xc5   :  { %v749_v34 = vadd.f32 %v742_v10, %v373_v31  ;;  %v208_v35 = vmax.f32 %v105_v32, %v175_v33 }
  0xc7   :  { %403 = vst [vmem:[#allocation7 + $0x10] sm:$0xff] %v749_v34  ;;  %v753_v36 = vadd.f32 %v495_v25, %v749_v34 }
  0xc8   :  { %v258_v37 = vpop.f32.mrf.mxu2  ;;  %v341_v38 = vpop.f32.mrf.mxu3 }
  0xc9   :  { %v291_v39 = vmax.f32 %v208_v35, %v258_v37  ;;  %v515_v35 = vmul.f32 %v749_v34, %v749_v34 }
  0xcb   :  { %v374_v40 = vmax.f32 %v291_v39, %v341_v38 }
  0xcc   :  { %v108_v41 = vpop.f32.mrf.mxu0  ;;  %v178_v42 = vpop.f32.mrf.mxu1 }
  0xcd   :  { %v756_v43 = vadd.f32 %v742_v10, %v374_v40  ;;  %v209_v44 = vmax.f32 %v108_v41, %v178_v42 }
  0xcf   :  { %404 = vst [vmem:[#allocation7 + $0x18] sm:$0xff] %v756_v43  ;;  %v516_v38 = vmul.f32 %v756_v43, %v756_v43 }
  0xd0   :  { %v261_v45 = vpop.f32.mrf.mxu2  ;;  %v344_v46 = vpop.f32.mrf.mxu3 }
  0xd1   :  { %v292_v47 = vmax.f32 %v209_v44, %v261_v45  ;;  %v527_v44 = vadd.f32 %v746_v29, %v515_v35  ;;  %v497_v45 = vadd.f32 %v753_v36, %v756_v43 }
  0xd3   :  { %v375_v48 = vmax.f32 %v292_v47, %v344_v46  ;;  %v528_v47 = vadd.f32 %v527_v44, %v516_v38 }
  0xd4   :  { %v111_v49 = vpop.f32.mrf.mxu0  ;;  %v181_v50 = vpop.f32.mrf.mxu1 }
  0xd5   :  { %v760_v51 = vadd.f32 %v742_v10, %v375_v48  ;;  %v210_v52 = vmax.f32 %v111_v49, %v181_v50 }
  0xd7   :  { %405 = vst [vmem:[#allocation7 + $0x20] sm:$0xff] %v760_v51  ;;  %v517_v46 = vmul.f32 %v760_v51, %v760_v51  ;;  %v498_v34 = vadd.f32 %v497_v45, %v760_v51 }
  0xd8   :  { %v264_v53 = vpop.f32.mrf.mxu2  ;;  %v347_v54 = vpop.f32.mrf.mxu3 }
  0xd9   :  { %v293_v55 = vmax.f32 %v210_v52, %v264_v53  ;;  %v415_v52 = vlaneseq }
  0xdb   :  { %v376_v56 = vmax.f32 %v293_v55, %v347_v54  ;;  %v529_v54 = vadd.f32 %v528_v47, %v517_v46 }
  0xdc   :  { %v114_v57 = vpop.f32.mrf.mxu0  ;;  %v184_v58 = vpop.f32.mrf.mxu1 }
  0xdd   :  { %v393_v59 = vadd.f32 %v742_v10, %v376_v56  ;;  %v211_v60 = vmax.f32 %v114_v57, %v184_v58 }
  0xdf   :  { %406 = vst [vmem:[#allocation7 + $0x28] sm:$0xff] %v393_v59  ;;  %v518_v48 = vmul.f32 %v393_v59, %v393_v59  ;;  %v499_v55 = vadd.f32 %v498_v34, %v393_v59 }
  0xe0   :  { %v267_v61 = vpop.f32.mrf.mxu2  ;;  %v350_v62 = vpop.f32.mrf.mxu3 }
  0xe1   :  { %v294_v63 = vmax.f32 %v211_v60, %v267_v61  ;;  %v530_v29 = vadd.f32 %v529_v54, %v518_v48  ;;  %v416_v61 = vshrl.u32 %v415_v52, 7 }
  0xe3   :  { %v377_v0 = vmax.f32 %v294_v63, %v350_v62 }
  0xe4   :  { %v117_v1 = vpop.f32.mrf.mxu0  ;;  %v187_v2 = vpop.f32.mrf.mxu1 }
  0xe5   :  { %v394_v3 = vadd.f32 %v742_v10, %v377_v0  ;;  %v212_v4 = vmax.f32 %v117_v1, %v187_v2 }
  0xe7   :  { %407 = vst [vmem:[#allocation7 + $0x30] sm:$0xff] %v394_v3  ;;  %v519_v56 = vmul.f32 %v394_v3, %v394_v3  ;;  %v500_v58 = vadd.f32 %v499_v55, %v394_v3 }
  0xe8   :  { %v270_v5 = vpop.f32.mrf.mxu2  ;;  %v353_v6 = vpop.f32.mrf.mxu3 }
  0xe9   :  { %v295_v7 = vmax.f32 %v212_v4, %v270_v5  ;;  %v531_v0 = vadd.f32 %v530_v29, %v519_v56 }
  0xeb   :  { %v378_v8 = vmax.f32 %v295_v7, %v353_v6  ;;  %v428_v7 = vadd.s32 96, %v416_v61 }
  0xec   :  { %v120_v9 = vpop.f32.mrf.mxu0  ;;  %v190_v11 = vpop.f32.mrf.mxu1 }
  0xed   :  { %v395_v12 = vadd.f32 %v742_v10, %v378_v8  ;;  %v213_v13 = vmax.f32 %v120_v9, %v190_v11  ;;  %vm455_vm0 = vcmp.lt.s32.totalorder %v428_v7, 98 }
  0xef   :  { %408 = vst [vmem:[#allocation7 + $0x38] sm:$0xff] %v395_v12  ;;  %v520_v60 = vmul.f32 %v395_v12, %v395_v12  ;;  %v501_v51 = vadd.f32 %v500_v58, %v395_v12 }
  0xf0   :  { %v273_v14 = vpop.f32.mrf.mxu2  ;;  %v356_v15 = vpop.f32.mrf.mxu3 }
  0xf1   :  { %v296_v16 = vmax.f32 %v213_v13, %v273_v14  ;;  %v532_v2 = vadd.f32 %v531_v0, %v520_v60 }
  0xf3   :  { %v379_v17 = vmax.f32 %v296_v16, %v356_v15 }
  0xf4   :  { %v123_v18 = vpop.f32.mrf.mxu0  ;;  %v193_v19 = vpop.f32.mrf.mxu1 }
  0xf5   :  { %v396_v20 = vadd.f32 %v742_v10, %v379_v17  ;;  %v214_v21 = vmax.f32 %v123_v18, %v193_v19 }
  0xf7   :  { %409 = vst [vmem:[#allocation7 + $0x40] sm:$0xff] %v396_v20  ;;  %v521_v1 = vmul.f32 %v396_v20, %v396_v20  ;;  %v502_v4 = vadd.f32 %v501_v51, %v396_v20 }
  0xf8   :  { %v276_v22 = vpop.f32.mrf.mxu2  ;;  %v359_v23 = vpop.f32.mrf.mxu3 }
  0xf9   :  { %v297_v24 = vmax.f32 %v214_v21, %v276_v22  ;;  %v533_v9 = vadd.f32 %v532_v2, %v521_v1 }
  0xfb   :  { %v380_v25 = vmax.f32 %v297_v24, %v359_v23 }
  0xfc   :  { %v126_v26 = vpop.f32.mrf.mxu0  ;;  %v196_v27 = vpop.f32.mrf.mxu1 }
  0xfd   :  { %v397_v28 = vadd.f32 %v742_v10, %v380_v25  ;;  %v215_v30 = vmax.f32 %v126_v26, %v196_v27 }
  0xff   :  { %410 = vst [vmem:[#allocation7 + $0x48] sm:$0xff] %v397_v28  ;;  %v522_v5 = vmul.f32 %v397_v28, %v397_v28  ;;  %v503_v3 = vadd.f32 %v502_v4, %v397_v28 }
 0x100   :  { %v279_v31 = vpop.f32.mrf.mxu2  ;;  %v362_v32 = vpop.f32.mrf.mxu3 }
 0x101   :  { %v298_v33 = vmax.f32 %v215_v30, %v279_v31  ;;  %v534_v12 = vadd.f32 %v533_v9, %v522_v5 }
 0x103   :  { %v381_v37 = vmax.f32 %v298_v33, %v362_v32 }
 0x104   :  { %v129_v39 = vpop.f32.mrf.mxu0  ;;  %v199_v40 = vpop.f32.mrf.mxu1 }
 0x105   :  { %v398_v41 = vadd.f32 %v742_v10, %v381_v37  ;;  %v216_v42 = vmax.f32 %v129_v39, %v199_v40 }
 0x107   :  { %411 = vst [vmem:[#allocation7 + $0x50] sm:$0xff] %v398_v41  ;;  %v523_v11 = vmul.f32 %v398_v41, %v398_v41  ;;  %v504_v14 = vadd.f32 %v503_v3, %v398_v41 }
 0x108   :  { %v282_v49 = vpop.f32.mrf.mxu2  ;;  %v365_v50 = vpop.f32.mrf.mxu3 }
 0x109   :  { %v299_v53 = vmax.f32 %v216_v42, %v282_v49  ;;  %v535_v17 = vadd.f32 %v534_v12, %v523_v11 }
 0x10b   :  { %v382_v57 = vmax.f32 %v299_v53, %v365_v50 }
 0x10c   :  { %v132_v36 = vpop.f32.mrf.mxu0  ;;  %v202_v43 = vpop.f32.mrf.mxu1 }
 0x10d   :  { %v399_v62 = vadd.f32 %v742_v10, %v382_v57  ;;  %v217_v63 = vmax.f32 %v132_v36, %v202_v43 }
 0x10f   :  { %412 = vst [vmem:[#allocation7 + $0x58] sm:$0xff] %v399_v62  ;;  %v524_v15 = vmul.f32 %v399_v62, %v399_v62  ;;  %v505_v18 = vadd.f32 %v504_v14, %v399_v62 }
 0x110   :  { %v285_v6 = vpop.f32.mrf.mxu2  ;;  %v368_v59 = vpop.f32.mrf.mxu3 }
 0x111   :  { %v300_v8 = vmax.f32 %v217_v63, %v285_v6  ;;  %v536_v20 = vadd.f32 %v535_v17, %v524_v15 }
 0x113   :  { %v383_v13 = vmax.f32 %v300_v8, %v368_v59 }
 0x115   :  { %v400_v16 = vadd.f32 %v742_v10, %v383_v13 }
 0x117   :  { %413 = vst [vmem:[#allocation7 + $0x60] sm:$0xff] %v400_v16  ;;  %v494_v19 = vsel %vm455_vm0, %v400_v16, 0.0 }
 0x118   :  { %v506_v21 = vadd.f32 %v505_v18, %v494_v19  ;;  %v525_v22 = vmul.f32 %v494_v19, %v494_v19  ;;  %561 = dma.vmem_to_hbm [thread:$0]  %s554_s27, 1664, %s556_s30, [#allocation4], %s697_s23, %s697_s23, %s698_s24  }
 0x11a   :  { %v507_v23 = vrot.slane %v506_v21, 4  ;;  %v537_v24 = vadd.f32 %v536_v20, %v525_v22 }
 0x11c   :  { %v508_v25 = vadd.f32 %v507_v23, %v506_v21  ;;  %v538_v26 = vrot.slane %v537_v24, 4 }
 0x11e   :  { %v509_v27 = vrot.slane %v508_v25, 2  ;;  %v539_v28 = vadd.f32 %v538_v26, %v537_v24 }
 0x120   :  { %v510_v10 = vadd.f32 %v509_v27, %v508_v25  ;;  %v540_v30 = vrot.slane %v539_v28, 2 }
 0x122   :  { %v511_v31 = vrot.slane %v510_v10, 1  ;;  %v541_v32 = vadd.f32 %v540_v30, %v539_v28 }
 0x124   :  { %v542_v33 = vrot.slane %v541_v32, 1  ;;  %v512_v35 = vadd.f32 %v511_v31, %v510_v10 }
 0x126   :  { %v543_v37 = vadd.f32 %v542_v33, %v541_v32 }
 0x128   :  { %v545_v38 = vsel %vm544_vm1, %v512_v35, %v543_v37 }
 0x129   :  { %v547_v39 = vsel %vm546_vm2, %v545_v38, 0.0 }
 0x12a   :  { %548 = vst [vmem:[#allocation8] sm:$0xff] %v547_v39 }
 0x12b   :  { %572 = dma.vmem_to_hbm [thread:$0]  %s568_s5, 128, %s570_s8, [#allocation9]  }
 0x12c   :  { %692 = dma.done.wait [#allocation4], 1664  }
 0x12d   :  { %693 = vsyncadd [#allocation4], 4294965632 }
 0x12e   :  { %694 = dma.done.wait [#allocation9], 128  }
 0x12f   :  { %695 = vsyncadd [#allocation9], 4294967168 }
 0x130   :  { %581 = vsyncpa [#allocation3], 1 }
 0x131   :  { %582 = vsyncpa [#allocation6], 1 }
 0x132   :  { %583 = vsyncpa [#allocation4], 1 }
 0x133   :  { %584 = vsyncpa [#allocation9], 1 }

</bundles_post_ra>
